<compile_context>
chip_gen: v7x
topology: tpu7x:2x2x1
jax: 0.10.0
libtpu: 0.0.40
codegen_flags: <defaults>
</compile_context>

<pallas_src>
import jax
import jax.numpy as jnp
from jax.experimental import pallas as pl
from jax.experimental.pallas import tpu as pltpu


def _sig_w_kernel(w_ref, out_ref):
    w = w_ref[...]                                     # (TM, C) float32
    tm, c = w.shape
    row0 = pl.program_id(0) * tm                       # global row offset of this tile

    # Diagonal mask for this row block.  Row iota is (TM, 1) so the +row0 add
    # is cheap; only the compare and the two masked combines are full-width.
    col = jax.lax.broadcasted_iota(jnp.int32, (tm, c), 1)
    row = jax.lax.broadcasted_iota(jnp.int32, (tm, 1), 0) + row0
    diag = col == row                                  # (TM, C) via broadcast

    # 1) the torch.no_grad() in-place diagonal write: weight[i, i] = -10000
    w = jnp.where(diag, jnp.float32(-10000.0), w)

    # 2) row-wise, numerically stable softmax (reductions -> XLU, exp -> EUP,
    #    both off the VALU critical slot).
    m = jnp.max(w, axis=1, keepdims=True)
    e = jnp.exp(w - m)
    s = jnp.sum(e, axis=1, keepdims=True)
    soft = e * pl.reciprocal(s, approx=False)          # exact: keeps 1e-5 tolerance

    # 3) out = (zeros - eye) + softmax == softmax - eye.  Done exactly (no
    #    hard-wired -1), so it matches the reference even when the diagonal
    #    softmax value does not underflow to 0.
    out_ref[...] = soft - jnp.where(diag, jnp.float32(1.0), jnp.float32(0.0))


_MIN_GRID_STEPS = 8             # target pipeline depth (review item #1)
_TILE_BYTES = 4 * 1024 * 1024   # ~4 MiB f32 per (TM, C) tile (review items #4/#5/#6)
_PALLAS_MIN_C = 512             # below this a single fused XLA op wins (review item #8)
_VMEM_LIMIT = 32 * 1024 * 1024  # 4 live tiles x 4 MiB = 16 MiB; 2x headroom, safe on all gens


def _round_down(x: int, m: int) -> int:
    return max(m, (x // m) * m)


def _pick_tm(c: int) -> int:
    """Row-tile size.

    Targets >= _MIN_GRID_STEPS row blocks so the BlockSpec pipeline can
    double-buffer HBM reads/writes behind compute (and v7x's 2 TensorCores
    each get several blocks), while keeping each (TM, C) f32 tile under
    _TILE_BYTES so the 4 live tiles (in + out, double-buffered) stay well
    inside scoped VMEM on every generation (v5e/v6e 128 MiB, v7x 64 MiB).
    TM is a multiple of 128 when possible, else a multiple of 8.
    """
    if c <= 128:
        return c                                  # single block (forced-kernel path only)
    budget_rows = _TILE_BYTES // (4 * c)          # rows fitting the byte budget
    depth_rows = pl.cdiv(c, _MIN_GRID_STEPS)      # rows giving >= 8 grid steps
    tm = min(budget_rows, depth_rows)
    tm = _round_down(tm, 128) if tm >= 128 else _round_down(tm, 8)
    return min(tm, c)


def _sig_w_jnp(weight: jax.Array) -> jax.Array:
    """Pure-XLA path (also the reference)."""
    c = weight.shape[0]
    eye = jnp.eye(c, dtype=jnp.float32)
    w = jnp.where(eye > 0, -10000.0, weight)
    return jax.nn.softmax(w, axis=1) - eye


def sig_w_forward(weight: jax.Array, *, use_pallas: bool | None = None) -> jax.Array:
    """weight: (C, C) float32 parameter. Returns (C, C) float32."""
    weight = weight.astype(jnp.float32)
    c = weight.shape[0]
    if use_pallas is None:
        # Small problems (<512**2 f32) are pure dispatch/launch overhead for a
        # kernel; a single fused XLA softmax+subtract wins there.
        use_pallas = c >= _PALLAS_MIN_C
    if not use_pallas:
        return _sig_w_jnp(weight)

    tm = _pick_tm(c)
    grid = (pl.cdiv(c, tm),)
    # NOTE: when C % tm != 0 the last block computes softmax over stale VMEM
    # padding rows; those rows are masked on writeback, so results are
    # unaffected (wasted work only).
    return pl.pallas_call(
        _sig_w_kernel,
        out_shape=jax.ShapeDtypeStruct((c, c), jnp.float32),
        grid=grid,
        in_specs=[pl.BlockSpec((tm, c), lambda i: (i, 0))],
        out_specs=pl.BlockSpec((tm, c), lambda i: (i, 0)),
        compiler_params=pltpu.CompilerParams(
            dimension_semantics=("parallel",),     # row blocks are independent
            vmem_limit_bytes=_VMEM_LIMIT,
        ),
    )(weight)


if __name__ == "__main__":
    key = jax.random.PRNGKey(0)
    k1, k2, k3 = jax.random.split(key, 3)

    # --- Case 1: the module's own configuration (num_class = 10) -----------
    num_class = 10
    init = 1.0 / (num_class - 1.0)
    w_small = init * jnp.ones((num_class, num_class), dtype=jnp.float32)
    w_small = w_small + 0.05 * jax.random.normal(
        k1, (num_class, num_class), dtype=jnp.float32)
    out_small = jax.block_until_ready(sig_w_forward(w_small, use_pallas=True))
    assert out_small.shape == (num_class, num_class)
    assert out_small.dtype == jnp.float32
    assert jnp.allclose(out_small, _sig_w_jnp(w_small), atol=1e-5, rtol=1e-5), \
        "small-C mismatch vs reference"

    # --- Case 2: C = 1024 -> TM = 128, grid = (8,): pipelined path ----------
    c_big = 1024
    w_big = (1.0 / (c_big - 1.0)) * jnp.ones((c_big, c_big), jnp.float32)
    w_big = w_big + 0.05 * jax.random.normal(k2, (c_big, c_big), jnp.float32)
    out_big = jax.block_until_ready(sig_w_forward(w_big))
    assert out_big.shape == (c_big, c_big)
    assert jnp.allclose(out_big, _sig_w_jnp(w_big), atol=1e-5, rtol=1e-5), \
        "large-C mismatch vs reference"

    # --- Case 3: C = 150 (C % TM != 0): masked partial last block -----------
    c_odd = 150
    w_odd = (1.0 / (c_odd - 1.0)) * jnp.ones((c_odd, c_odd), jnp.float32)
    w_odd = w_odd + 0.05 * jax.random.normal(k3, (c_odd, c_odd), jnp.float32)
    out_odd = jax.block_until_ready(sig_w_forward(w_odd, use_pallas=True))
    assert out_odd.shape == (c_odd, c_odd)
    assert jnp.allclose(out_odd, _sig_w_jnp(w_odd), atol=1e-5, rtol=1e-5), \
        "odd-C mismatch vs reference"

    print("KERNEL_OK")
</pallas_src>

<mosaic_0001>
module attributes {stable_mosaic.version = 11 : i64} {
  func.func @_sig_w_kernel(%arg0: i32, %arg1: memref<10x10xf32, #tpu.memory_space<vmem>>, %arg2: memref<10x10xf32, #tpu.memory_space<vmem>>) attributes {dimension_semantics = [#tpu.dimension_semantics<parallel>], iteration_bounds = array<i64: 1>, scalar_prefetch = 0 : i64, scratch_operands = 0 : i64, tpu.core_type = #tpu.core_type<tc>, window_params = [{transform_indices = @transform_0, window_bounds = array<i64: 10, 10>}, {transform_indices = @transform_1, window_bounds = array<i64: 10, 10>}]} {
    %c0 = arith.constant 0 : index
    %c0_0 = arith.constant 0 : index
    %0 = vector.load %arg1[%c0, %c0_0] : memref<10x10xf32, #tpu.memory_space<vmem>>, vector<10x10xf32>
    %c10_i32 = arith.constant 10 : i32
    %1 = arith.muli %arg0, %c10_i32 : i32
    %2 = tpu.iota {dimensions = array<i32: 1>} : vector<10x10xi32>
    %3 = tpu.iota {dimensions = array<i32: 0>} : vector<10x1xi32>
    %4 = vector.broadcast %1 : i32 to vector<10x1xi32>
    %5 = arith.addi %3, %4 : vector<10x1xi32>
    %6 = vector.broadcast %5 : vector<10x1xi32> to vector<10x10xi32>
    %7 = arith.cmpi eq, %2, %6 : vector<10x10xi32>
    %cst = arith.constant -1.000000e+04 : f32
    %8 = vector.broadcast %cst : f32 to vector<10x10xf32>
    %9 = arith.select %7, %8, %0 : vector<10x10xi1>, vector<10x10xf32>
    %cst_1 = arith.constant dense<0xFF800000> : vector<10xf32>
    %10 = vector.multi_reduction <maximumf>, %9, %cst_1 [1] : vector<10x10xf32> to vector<10xf32>
    %11 = vector.shape_cast %10 : vector<10xf32> to vector<10x1xf32>
    %12 = vector.broadcast %11 : vector<10x1xf32> to vector<10x10xf32>
    %13 = arith.subf %9, %12 : vector<10x10xf32>
    %14 = math.exp %13 : vector<10x10xf32>
    %cst_2 = arith.constant dense<0.000000e+00> : vector<10xf32>
    %15 = vector.multi_reduction <add>, %14, %cst_2 [1] : vector<10x10xf32> to vector<10xf32>
    %16 = vector.shape_cast %15 : vector<10xf32> to vector<10x1xf32>
    %17 = tpu.reciprocal %16 : vector<10x1xf32> -> vector<10x1xf32>
    %18 = vector.broadcast %17 : vector<10x1xf32> to vector<10x10xf32>
    %19 = arith.mulf %14, %18 : vector<10x10xf32>
    %cst_3 = arith.constant 1.000000e+00 : f32
    %cst_4 = arith.constant 0.000000e+00 : f32
    %20 = vector.broadcast %cst_3 : f32 to vector<10x10xf32>
    %21 = vector.broadcast %cst_4 : f32 to vector<10x10xf32>
    %22 = arith.select %7, %20, %21 : vector<10x10xi1>, vector<10x10xf32>
    %23 = arith.subf %19, %22 : vector<10x10xf32>
    %c0_5 = arith.constant 0 : index
    %c0_6 = arith.constant 0 : index
    %24 = vector.load %arg2[%c0_5, %c0_6] : memref<10x10xf32, #tpu.memory_space<vmem>>, vector<10x10xf32>
    tpu.vector_store %arg2[%c0_5, %c0_6], %23 {strides = array<i32>} : memref<10x10xf32, #tpu.memory_space<vmem>>, vector<10x10xf32>,
    return
  }
  func.func @transform_0(%arg0: i32) -> (i32, i32) {
    %c0_i32 = arith.constant 0 : i32
    %c0_i32_0 = arith.constant 0 : i32
    return %arg0, %c0_i32 : i32, i32
  }
  func.func @transform_1(%arg0: i32) -> (i32, i32) {
    %c0_i32 = arith.constant 0 : i32
    %c0_i32_0 = arith.constant 0 : i32
    return %arg0, %c0_i32 : i32, i32
  }
}

</mosaic_0001>

<bundles_post_ra>
// kernel: tpu_custom_call.1
= control target key start
LH: loop header
LB: loop body
LE: loop exit
PB: predicated region body
PF: predicated region fallthrough
CT: control target
= control target key end

     0   :  { %6 = vsyncpa [#allocation3], 0  ;;  %s201_s0 = inlined_call_operand.hbm [shape: f32[10,10], index: 0, kind: input, shape index: {}]   ;;  %s202_s1 = inlined_call_operand.hbm [shape: f32[10,10], index: 1, kind: output, shape index: {}]  }
   0x1   :  { %7 = vsyncpa [#allocation4], 0  ;;  %s146_s6 = smov [#allocation2]   ;;  %s98_s10 = scalar_lea.hbm %s201_s0, 256 }
   0x2   :  { %s13_s7 = sshll.u32 %s146_s6, 4  ;;  %p99_p0 = scmp.ne.s32.totalorder %s201_s0, %s98_s10  ;;  %s14_s7 = int_to_ptr.vmem [resolvable:$true] %s13_s7 }
   0x3   :  { %p102_p1 = scmp.lt.u32.totalorder %s98_s10, %s201_s0 }
   0x5   :  { %p104_p2 = pnand %p102_p1, %p99_p0 }
   0x7   :  { %107 = shalt.err (!%p104_p2)
}
   0x8   :  { %s108_s15 = scalar_lea.vmem %s14_s7, 256  ;;  %p113_p4 = scmp.lt.s32.totalorder %s14_s7, %s14_s7 }
   0x9   :  { %p109_p3 = scmp.ne.s32.totalorder %s14_s7, %s108_s15  ;;  %p114_p5 = scmp.lt.s32.totalorder %s108_s15, %s108_s15 }
   0xb   :  { %p115_p6 = por %p114_p5, %p113_p4 }
   0xd   :  { %p116_p7 = pnand %p115_p6, %p109_p3 }
   0xf   :  { %119 = shalt.err (!%p116_p7)
}
  0x10   :  { %s147_s16 = smov 128   ;;  %s148_s17 = smov 8  }
  0x11   :  { %19 = dma.hbm_to_vmem [thread:$0]  %s201_s0, 256, %s14_s7, [#allocation3], %s147_s16, %s147_s16, %s148_s17  }
  0x12   :  { %142 = dma.done.wait [#allocation3], 256  }
  0x13   :  { %143 = vsyncadd [#allocation3], 4294967040  ;;  %v26_v0 = vlaneseq  ;;  %vm38_vm1 = vcmask 80896   ;;  %v23_v4 = vld [vmem:[#allocation2] sm:$0xff]  ;;  %v24_v5 = vld [vmem:[#allocation2 + $0x8] sm:$0x3] }
  0x14   :  { %vm42_vm3 = vcmask 74752   ;;  %v149_v23 = vmov 0.0   ;;  %s150_s0 = smov [#allocation5]  }
  0x15   :  { %v27_v1 = vand.u32 127, %v26_v0  ;;  %v29_v2 = vshrl.u32 %v26_v0, 7  ;;  %s73_s20 = sshll.u32 %s150_s0, 4  ;;  %s74_s20 = int_to_ptr.vmem [resolvable:$true] %s73_s20 }
  0x16   :  { %s120_s21 = scalar_lea.vmem %s74_s20, 256  ;;  %p125_p9 = scmp.lt.s32.totalorder %s74_s20, %s74_s20 }
  0x17   :  { %v30_v3 = vadd.s32 8, %v29_v2  ;;  %vm34_vm0 = vcmp.eq.s32.totalorder %v27_v1, %v29_v2  ;;  %p121_p8 = scmp.ne.s32.totalorder %s74_s20, %s120_s21  ;;  %p126_p10 = scmp.lt.s32.totalorder %s120_s21, %s120_s21 }
  0x18   :  { %v36_v6 = vsel %vm34_vm0, -10000.0, %v23_v4  ;;  %v62_v24 = vsel %vm34_vm0, 1.0, %v149_v23 }
  0x19   :  { %vm35_vm2 = vcmp.eq.s32.totalorder %v27_v1, %v30_v3  ;;  %v39_v8 = vsel %vm38_vm1, %v36_v6, -inf  ;;  %p127_p11 = por %p126_p10, %p125_p9 }
  0x1a   :  { %v37_v7 = vsel %vm35_vm2, -10000.0, %v24_v5  ;;  %40 = vmax.xlane.f32.xlu0 %v39_v8  ;;  %v63_v28 = vsel %vm35_vm2, 1.0, %v149_v23 }
  0x1b   :  { %v43_v9 = vsel %vm42_vm3, %v37_v7, -inf  ;;  %p128_p12 = pnand %p127_p11, %p121_p8 }
  0x1e   :  { %44 = vmax.xlane.f32.xlu0 %v43_v9 }
  0xa7   :  { %v41_v10 = vpop.xlane.xlu0 %40 }
  0xa8   :  { %v46_v11 = vsub.f32 %v36_v6, %v41_v10 }
  0xaa   :  { %v48_v12 = vmul.f32 1.442695, %v46_v11 }
  0xab   :  { %v45_v13 = vpop.xlane.xlu0 %44 }
  0xac   :  { %90 = vpow2.f32 %v48_v12  ;;  %v47_v14 = vsub.f32 %v37_v7, %v45_v13 }
  0xae   :  { %v50_v15 = vmul.f32 1.442695, %v47_v14 }
  0xb0   :  { %92 = vpow2.f32 %v50_v15 }
  0xb6   :  { %v91_v16 = vpop.eup %90 }
  0xb7   :  { %v52_v17 = vsel %vm38_vm1, %v91_v16, 0.0 }
  0xb8   :  { %53 = vadd.xlane.f32.xlu1 %v52_v17 }
  0xba   :  { %v93_v18 = vpop.eup %92 }
  0xbb   :  { %v55_v19 = vsel %vm42_vm3, %v93_v18, 0.0 }
  0xbc   :  { %56 = vadd.xlane.f32.xlu1 %v55_v19 }
 0x145   :  { %v54_v20 = vpop.xlane.xlu1 %53 }
 0x146   :  { %94 = vrcp.f32 %v54_v20 }
 0x149   :  { %v57_v21 = vpop.xlane.xlu1 %56 }
 0x14a   :  { %96 = vrcp.f32 %v57_v21 }
 0x150   :  { %v95_v22 = vpop.eup %94 }
 0x151   :  { %v60_v25 = vmul.f32 %v95_v22, %v91_v16 }
 0x153   :  { %v64_v26 = vsub.f32 %v60_v25, %v62_v24 }
 0x154   :  { %v97_v27 = vpop.eup %96 }
 0x155   :  { %v61_v29 = vmul.f32 %v97_v27, %v93_v18  ;;  %66 = vst.msk [vmem:[#allocation5] sm:$0xff] %vm38_vm1, %v64_v26 }
 0x157   :  { %v65_v30 = vsub.f32 %v61_v29, %v63_v28 }
 0x159   :  { %67 = vst.msk [vmem:[#allocation5 + $0x8] sm:$0x3] %vm42_vm3, %v65_v30 }
 0x15a   :  { %131 = shalt.err (!%p128_p12)
}
 0x15b   :  { %s132_s24 = scalar_lea.hbm %s202_s1, 256 }
 0x15c   :  { %p133_p13 = scmp.ne.s32.totalorder %s202_s1, %s132_s24  ;;  %p136_p0 = scmp.lt.u32.totalorder %s132_s24, %s202_s1 }
 0x15e   :  { %p138_p1 = pnand %p136_p0, %p133_p13 }
 0x160   :  { %141 = shalt.err (!%p138_p1)
}
 0x161   :  { %79 = dma.vmem_to_hbm [thread:$0]  %s74_s20, 256, %s202_s1, [#allocation4], %s147_s16, %s147_s16, %s148_s17  }
 0x162   :  { %144 = dma.done.wait [#allocation4], 256  }
 0x163   :  { %145 = vsyncadd [#allocation4], 4294967040 }
 0x164   :  { %83 = vsyncpa [#allocation3], 1 }
 0x165   :  { %84 = vsyncpa [#allocation4], 1 }

</bundles_post_ra>
